<compile_context>
chip_gen: v5e
topology: v5e:2x2
jax: 0.10.0
libtpu: 0.0.40
codegen_flags: <defaults>
</compile_context>

<pallas_src>
import functools

import jax
import jax.numpy as jnp
from jax.experimental import pallas as pl
from jax.experimental.pallas import tpu as pltpu


_BD_WEIGHT_BYTES_MAX = 4 << 20   # budget for the block-diagonal single-matmul weight
_KFOLD_MAX_DEPTH = 256           # fold K into the contraction only below this depth
                                 # (MXU contraction depth: 256 on v6e/v7x, 128 on v5e)


def _round_up(x, m):
    return (x + m - 1) // m * m


def _tap_slices(x_ref, h_ref, *, kernel_size, stride, c_in_pad, tile_l):
    """Per-tap (C_in_pad, TL) views of the phase-merged slab.

    x_ref: (1, S*C_in_pad, TL)    main lane block for this output tile
    h_ref: (1, S*C_in_pad, HALO)  right halo block (None when K <= S)
    Tap k with (q, r) = divmod(k, S) lives at sublane offset r*C_in_pad
    (aligned) and static lane offset q of the concatenated slab.
    """
    if h_ref is not None:
        slab = jnp.concatenate([x_ref[0], h_ref[0]], axis=-1)
    else:
        slab = x_ref[0]
    taps = []
    for k in range(kernel_size):
        q, r = divmod(k, stride)
        taps.append(slab[r * c_in_pad:(r + 1) * c_in_pad, q:q + tile_l])
    return taps


def _conv1d_bd_kernel(*refs, kernel_size, stride, c_in_pad, tile_l, halo, fold_k):
    """Single-matmul path (block-diagonal weight; covers groups==1 and
    many-groups / small-cig configs).

    fold_k:  w_ref (C_out_pad, K*C_in_pad)   one (C_out_pad,K*C_in_pad)@(K*C_in_pad,TL) dot
    else:    w_ref (K, C_out_pad, C_in_pad)  K accumulating (C_out_pad,C_in_pad)@(C_in_pad,TL) dots
    """
    if halo:
        x_ref, h_ref, w_ref, b_ref, o_ref = refs
    else:
        x_ref, w_ref, b_ref, o_ref = refs
        h_ref = None
    taps = _tap_slices(x_ref, h_ref, kernel_size=kernel_size, stride=stride,
                       c_in_pad=c_in_pad, tile_l=tile_l)
    if fold_k:
        patch = taps[0] if kernel_size == 1 else jnp.concatenate(taps, axis=0)
        acc = jnp.dot(w_ref[...], patch, preferred_element_type=jnp.float32)
    else:
        acc = jnp.dot(w_ref[0], taps[0], preferred_element_type=jnp.float32)
        for k in range(1, kernel_size):
            acc = acc + jnp.dot(w_ref[k], taps[k], preferred_element_type=jnp.float32)
    o_ref[0] = (acc + b_ref[...]).astype(o_ref.dtype)      # one dense, unmasked store


def _conv1d_grp_kernel(*refs, kernel_size, stride, c_in_pad, groups, cig, c_out,
                       tile_l, halo, fold_k):
    """Per-group fallback for large per-group blocks (block-diag weight too big).

    fold_k:  w_ref (groups, cog, K*cig)
    else:    w_ref (K*groups, cog, cig)   indexed [k*groups + g]
    """
    if halo:
        x_ref, h_ref, w_ref, b_ref, o_ref = refs
    else:
        x_ref, w_ref, b_ref, o_ref = refs
        h_ref = None
    taps = _tap_slices(x_ref, h_ref, kernel_size=kernel_size, stride=stride,
                       c_in_pad=c_in_pad, tile_l=tile_l)
    rows = []
    for g in range(groups):
        g_taps = [t[g * cig:(g + 1) * cig, :] for t in taps]
        if fold_k:
            patch = g_taps[0] if kernel_size == 1 else jnp.concatenate(g_taps, axis=0)
            acc = jnp.dot(w_ref[g], patch, preferred_element_type=jnp.float32)
        else:
            acc = jnp.dot(w_ref[g], g_taps[0], preferred_element_type=jnp.float32)
            for k in range(1, kernel_size):
                acc = acc + jnp.dot(w_ref[k * groups + g], g_taps[k],
                                    preferred_element_type=jnp.float32)
        rows.append(acc)
    out = jnp.concatenate(rows, axis=0) if groups > 1 else rows[0]
    c_out_pad = o_ref.shape[1]
    if c_out_pad > c_out:
        out = jnp.concatenate(
            [out, jnp.zeros((c_out_pad - c_out, tile_l), jnp.float32)], axis=0)
    o_ref[0] = (out + b_ref[...]).astype(o_ref.dtype)


def _conv1d_dw_kernel(*refs, kernel_size, stride, c_in_pad, tile_l, halo):
    """Pure depthwise conv (cig == cog == 1): VPU multiply-accumulate path."""
    if halo:
        x_ref, h_ref, w_ref, b_ref, o_ref = refs
    else:
        x_ref, w_ref, b_ref, o_ref = refs
        h_ref = None
    taps = _tap_slices(x_ref, h_ref, kernel_size=kernel_size, stride=stride,
                       c_in_pad=c_in_pad, tile_l=tile_l)
    acc = jnp.zeros((c_in_pad, tile_l), jnp.float32)
    for k in range(kernel_size):
        acc = acc + taps[k].astype(jnp.float32) * w_ref[:, k:k + 1]
    o_ref[0] = (acc + b_ref[...]).astype(o_ref.dtype)


def my_conv1d_pad_same(x, weight, bias, *, stride, groups):
    """Equivalent of MyConv1dPadSame.forward(x)."""
    N, C_in, L = x.shape
    C_out, cig, K = weight.shape
    assert C_in % groups == 0 and C_out % groups == 0 and cig == C_in // groups
    cog = C_out // groups
    S = stride

    # SAME padding arithmetic — identical to the PyTorch module.
    L_out = -(-L // S)
    p = max(0, (L_out - 1) * S + K - L)
    pad_left = p // 2

    itemsize = jnp.dtype(x.dtype).itemsize
    sub = max(8, 32 // itemsize)                 # sublane tile of x/out dtype
    C_in_pad = _round_up(C_in, sub)
    C_out_pad = _round_up(C_out, sub)

    # Lane-dense output tiling (multiple of 128) + right halo for the tap shifts.
    Q = (K - 1) // S                             # max lane shift per tap
    HALO = _round_up(Q, 128) if Q > 0 else 0
    TL = min(1024, _round_up(L_out, 128))
    if HALO:
        TL = _round_up(TL, HALO)                 # halo block index must divide evenly
    L_out_pad = _round_up(L_out, TL)
    num_t = L_out_pad // TL
    L_cols = _round_up(max(L_out_pad + HALO, -(-(L + p) // S)), 128)

    # Phase-merged, channel-padded input (N, S*C_in_pad, L_cols):
    #   x_r[n, r*C_in_pad + c, j] = x_pad[n, c, j*S + r]
    # so tap k = q*S + r is a sublane-aligned row block at static lane offset q.
    # TODO(synk): fuse this pad/transpose into the pallas_call via
    # CompilerParams(allow_input_fusion=...) to drop one HBM round trip.
    x_pad = jnp.pad(x, ((0, 0), (0, C_in_pad - C_in),
                        (pad_left, S * L_cols - L - pad_left)))
    x_r = (x_pad.reshape(N, C_in_pad, L_cols, S)
                .transpose(0, 3, 1, 2)
                .reshape(N, S * C_in_pad, L_cols))

    b_r = jnp.pad(bias.astype(jnp.float32), (0, C_out_pad - C_out)).reshape(C_out_pad, 1)

    halo = HALO > 0
    x_specs = [pl.BlockSpec((1, S * C_in_pad, TL), lambda n, t: (n, 0, t))]
    x_args = [x_r]
    if halo:
        ratio = TL // HALO
        x_specs.append(pl.BlockSpec((1, S * C_in_pad, HALO),
                                    lambda n, t: (n, 0, (t + 1) * ratio)))
        x_args.append(x_r)             # same array, haloed window

    if cig == 1 and cog == 1:
        # Pure depthwise: skip the MXU, VPU multiply-accumulate.
        w_a = jnp.pad(weight.reshape(C_out, K).astype(jnp.float32),
                      ((0, C_in_pad - C_out), (0, 0)))
        w_spec = pl.BlockSpec((C_in_pad, K), lambda n, t: (0, 0))
        kernel = functools.partial(_conv1d_dw_kernel, kernel_size=K, stride=S,
                                   c_in_pad=C_in_pad, tile_l=TL, halo=halo)
    else:
        bd_bytes = C_out_pad * K * C_in_pad * itemsize
        if groups == 1 or bd_bytes <= _BD_WEIGHT_BYTES_MAX:
            # Single matmul against a block-diagonal, C_out_pad-row weight
            # (zero rows give the output padding for free; no per-step concat).
            fold_k = (C_in_pad < _KFOLD_MAX_DEPTH) or (K == 1)
            if groups > 1:
                eye = jnp.eye(groups, dtype=weight.dtype)
                wg = weight.reshape(groups, cog, cig, K)
                w_full = (eye[:, None, :, None, None] * wg[:, :, None, :, :]
                          ).reshape(C_out, C_in, K)
            else:
                w_full = weight
            w_full = jnp.pad(w_full, ((0, C_out_pad - C_out),
                                      (0, C_in_pad - C_in), (0, 0))).astype(x.dtype)
            if fold_k:
                w_a = w_full.transpose(0, 2, 1).reshape(C_out_pad, K * C_in_pad)
                w_spec = pl.BlockSpec((C_out_pad, K * C_in_pad), lambda n, t: (0, 0))
            else:
                w_a = w_full.transpose(2, 0, 1)              # (K, C_out_pad, C_in_pad)
                w_spec = pl.BlockSpec((K, C_out_pad, C_in_pad), lambda n, t: (0, 0, 0))
            kernel = functools.partial(_conv1d_bd_kernel, kernel_size=K, stride=S,
                                       c_in_pad=C_in_pad, tile_l=TL, halo=halo,
                                       fold_k=fold_k)
        else:
            # Per-group fallback (large per-group blocks).
            fold_k = (cig < _KFOLD_MAX_DEPTH) or (K == 1)
            if fold_k:
                w_a = (weight.transpose(0, 2, 1)
                             .reshape(groups, cog, K * cig).astype(x.dtype))
                w_spec = pl.BlockSpec((groups, cog, K * cig), lambda n, t: (0, 0, 0))
            else:
                w_a = (weight.reshape(groups, cog, cig, K)
                             .transpose(3, 0, 1, 2)
                             .reshape(K * groups, cog, cig).astype(x.dtype))
                w_spec = pl.BlockSpec((K * groups, cog, cig), lambda n, t: (0, 0, 0))
            kernel = functools.partial(_conv1d_grp_kernel, kernel_size=K, stride=S,
                                       c_in_pad=C_in_pad, groups=groups, cig=cig,
                                       c_out=C_out, tile_l=TL, halo=halo,
                                       fold_k=fold_k)

    w_bytes = int(w_a.size) * jnp.dtype(w_a.dtype).itemsize

    # Scoped-VMEM budget: double-buffered x/halo/out blocks + weights + f32
    # temporaries (patch + accumulator) + slack.
    x_blk = S * C_in_pad * TL * itemsize
    h_blk = S * C_in_pad * HALO * itemsize
    o_blk = C_out_pad * TL * itemsize
    tmp = 4 * (K * C_in_pad + 2 * C_out_pad) * TL
    needed = 2 * (x_blk + h_blk + o_blk) + 2 * w_bytes + tmp + (2 << 20)
    vmem_limit = int(min(max(needed, 16 << 20), 128 << 20))

    cost = pl.CostEstimate(
        flops=int(2 * N * L_out * C_out * cig * K),
        transcendentals=0,
        bytes_accessed=int(x_r.size * itemsize + w_bytes + b_r.size * 4
                           + N * C_out_pad * L_out_pad * itemsize))

    out = pl.pallas_call(
        kernel,
        out_shape=jax.ShapeDtypeStruct((N, C_out_pad, L_out_pad), x.dtype),
        grid=(N, num_t),
        in_specs=x_specs + [w_spec, pl.BlockSpec((C_out_pad, 1), lambda n, t: (0, 0))],
        out_specs=pl.BlockSpec((1, C_out_pad, TL), lambda n, t: (n, 0, t)),
        compiler_params=pltpu.CompilerParams(
            dimension_semantics=("parallel", "parallel"),
            vmem_limit_bytes=vmem_limit),
        cost_estimate=cost,
    )(*x_args, w_a, b_r)

    if C_out_pad != C_out or L_out_pad != L_out:
        out = out[:, :C_out, :L_out]
    return out


def _reference(x, weight, bias, *, stride, groups):
    L = x.shape[-1]
    K = weight.shape[-1]
    L_out = (L + stride - 1) // stride
    p = max(0, (L_out - 1) * stride + K - L)
    return jax.lax.conv_general_dilated(
        x, weight, window_strides=(stride,),
        padding=[(p // 2, p - p // 2)],
        feature_group_count=groups,
        dimension_numbers=("NCH", "OIH", "NCH")) + bias[None, :, None]


if __name__ == "__main__":
    key = jax.random.PRNGKey(0)

    def q(a):
        # Round test data to bf16-representable f32 so kernel-vs-reference
        # differences reflect accumulation order only, not MXU input rounding.
        return a.astype(jnp.bfloat16).astype(jnp.float32)

    def check(x, w, b, *, stride, groups, atol=1e-4):
        out = jax.block_until_ready(
            my_conv1d_pad_same(x, w, b, stride=stride, groups=groups))
        ref = _reference(x, w, b, stride=stride, groups=groups)
        assert out.shape == ref.shape, (out.shape, ref.shape)
        assert jnp.allclose(out, ref, atol=atol, rtol=1e-4), \
            float(jnp.max(jnp.abs(out - ref)))

    # --- grouped conv -> block-diagonal single-matmul (MXU) path ---
    kx, kw, kb, key = jax.random.split(key, 4)
    x = q(jax.random.normal(kx, (2, 4, 16), jnp.float32))
    w = q(jax.random.normal(kw, (8, 2, 5), jnp.float32) * 0.1)
    b = q(jax.random.normal(kb, (8,), jnp.float32) * 0.1)
    check(x, w, b, stride=2, groups=2)

    # --- ungrouped conv, stride 3 (more phases / taps) ---
    kx, kw, kb, key = jax.random.split(key, 4)
    x1 = q(jax.random.normal(kx, (2, 4, 19), jnp.float32))
    w1 = q(jax.random.normal(kw, (8, 4, 7), jnp.float32) * 0.1)
    b1 = q(jax.random.normal(kb, (8,), jnp.float32) * 0.1)
    check(x1, w1, b1, stride=3, groups=1)

    # --- deep contraction -> depth-aware unfolded (K accumulating dots) path ---
    kx, kw, kb, key = jax.random.split(key, 4)
    x2 = q(jax.random.normal(kx, (1, 256, 16), jnp.float32))
    w2 = q(jax.random.normal(kw, (8, 256, 3), jnp.float32) * 0.05)
    b2 = q(jax.random.normal(kb, (8,), jnp.float32) * 0.1)
    check(x2, w2, b2, stride=1, groups=1, atol=5e-4)

    # --- per-group fallback paths (forced by shrinking the block-diag budget) ---
    _saved_bd, _saved_fold = _BD_WEIGHT_BYTES_MAX, _KFOLD_MAX_DEPTH
    _BD_WEIGHT_BYTES_MAX = 0
    check(x, w, b, stride=2, groups=2)              # per-group, K folded
    _KFOLD_MAX_DEPTH = 1
    check(x, w, b, stride=2, groups=2)              # per-group, K unfolded
    _BD_WEIGHT_BYTES_MAX, _KFOLD_MAX_DEPTH = _saved_bd, _saved_fold

    # --- pure depthwise conv -> VPU path ---
    kx, kw, kb, key = jax.random.split(key, 4)
    xd = q(jax.random.normal(kx, (2, 8, 16), jnp.float32))
    wd = q(jax.random.normal(kw, (8, 1, 3), jnp.float32) * 0.1)
    bd = q(jax.random.normal(kb, (8,), jnp.float32) * 0.1)
    check(xd, wd, bd, stride=1, groups=8)

    print("KERNEL_OK")
</pallas_src>

<mosaic_0001>
module attributes {stable_mosaic.version = 11 : i64} {
  func.func @_conv1d_bd_kernel(%arg0: i32, %arg1: i32, %arg2: memref<1x16x128xf32, #tpu.memory_space<vmem>>, %arg3: memref<1x16x128xf32, #tpu.memory_space<vmem>>, %arg4: memref<8x40xf32, #tpu.memory_space<vmem>>, %arg5: memref<8x1xf32, #tpu.memory_space<vmem>>, %arg6: memref<1x8x128xf32, #tpu.memory_space<vmem>>) attributes {dimension_semantics = [#tpu.dimension_semantics<parallel>, #tpu.dimension_semantics<parallel>], iteration_bounds = array<i64: 2, 1>, scalar_prefetch = 0 : i64, scratch_operands = 0 : i64, tpu.core_type = #tpu.core_type<tc>, window_params = [{transform_indices = @transform_0, window_bounds = array<i64: 1, 16, 128>}, {transform_indices = @transform_1, window_bounds = array<i64: 1, 16, 128>}, {pipeline_mode = #tpu.pipeline_mode<synchronous>, transform_indices = @transform_2, window_bounds = array<i64: 8, 40>}, {pipeline_mode = #tpu.pipeline_mode<synchronous>, transform_indices = @transform_3, window_bounds = array<i64: 8, 1>}, {transform_indices = @transform_4, window_bounds = array<i64: 1, 8, 128>}]} {
    %c0 = arith.constant 0 : index
    %c0_0 = arith.constant 0 : index
    %c0_1 = arith.constant 0 : index
    %0 = vector.load %arg2[%c0, %c0_0, %c0_1] : memref<1x16x128xf32, #tpu.memory_space<vmem>>, vector<1x16x128xf32>
    %1 = vector.shape_cast %0 : vector<1x16x128xf32> to vector<16x128xf32>
    %c0_2 = arith.constant 0 : index
    %c0_3 = arith.constant 0 : index
    %c0_4 = arith.constant 0 : index
    %2 = vector.load %arg3[%c0_2, %c0_3, %c0_4] : memref<1x16x128xf32, #tpu.memory_space<vmem>>, vector<1x16x128xf32>
    %3 = vector.shape_cast %2 : vector<1x16x128xf32> to vector<16x128xf32>
    %4 = tpu.concatenate %1, %3 in 1 : vector<16x128xf32>, vector<16x128xf32> -> vector<16x256xf32>
    %5 = vector.extract_strided_slice %4 {offsets = [0, 0], sizes = [8, 128], strides = [1, 1]} : vector<16x256xf32> to vector<8x128xf32>
    %6 = vector.extract_strided_slice %4 {offsets = [8, 0], sizes = [8, 128], strides = [1, 1]} : vector<16x256xf32> to vector<8x128xf32>
    %7 = vector.extract_strided_slice %4 {offsets = [0, 1], sizes = [8, 128], strides = [1, 1]} : vector<16x256xf32> to vector<8x128xf32>
    %8 = vector.extract_strided_slice %4 {offsets = [8, 1], sizes = [8, 128], strides = [1, 1]} : vector<16x256xf32> to vector<8x128xf32>
    %9 = vector.extract_strided_slice %4 {offsets = [0, 2], sizes = [8, 128], strides = [1, 1]} : vector<16x256xf32> to vector<8x128xf32>
    %10 = tpu.concatenate %5, %6, %7, %8, %9 in 0 : vector<8x128xf32>, vector<8x128xf32>, vector<8x128xf32>, vector<8x128xf32>, vector<8x128xf32> -> vector<40x128xf32>
    %c0_5 = arith.constant 0 : index
    %c0_6 = arith.constant 0 : index
    %11 = vector.load %arg4[%c0_5, %c0_6] : memref<8x40xf32, #tpu.memory_space<vmem>>, vector<8x40xf32>
    %cst = arith.constant dense<0.000000e+00> : vector<8x128xf32>
    %12 = tpu.matmul %11, %10, %cst {dimension_numbers = #tpu.dot_dimension_numbers<[1], [0], [0], [1], [0, 0, 1, 1], [], []>} : vector<8x40xf32>, vector<40x128xf32>, vector<8x128xf32> -> vector<8x128xf32>
    %c0_7 = arith.constant 0 : index
    %c0_8 = arith.constant 0 : index
    %13 = vector.load %arg5[%c0_7, %c0_8] : memref<8x1xf32, #tpu.memory_space<vmem>>, vector<8x1xf32>
    %14 = vector.broadcast %13 : vector<8x1xf32> to vector<8x128xf32>
    %15 = arith.addf %12, %14 : vector<8x128xf32>
    %c0_9 = arith.constant 0 : index
    %c0_10 = arith.constant 0 : index
    %c0_11 = arith.constant 0 : index
    %16 = vector.load %arg6[%c0_9, %c0_10, %c0_11] : memref<1x8x128xf32, #tpu.memory_space<vmem>>, vector<1x8x128xf32>
    %17 = vector.shape_cast %16 : vector<1x8x128xf32> to vector<8x128xf32>
    %18 = vector.shape_cast %15 : vector<8x128xf32> to vector<1x8x128xf32>
    tpu.vector_store %arg6[%c0_9, %c0_10, %c0_11], %18 {strides = array<i32>} : memref<1x8x128xf32, #tpu.memory_space<vmem>>, vector<1x8x128xf32>,
    return
  }
  func.func @transform_0(%arg0: i32, %arg1: i32) -> (i32, i32, i32) {
    %c0_i32 = arith.constant 0 : i32
    %c0_i32_0 = arith.constant 0 : i32
    return %arg0, %c0_i32, %arg1 : i32, i32, i32
  }
  func.func @transform_1(%arg0: i32, %arg1: i32) -> (i32, i32, i32) {
    %c1_i32 = arith.constant 1 : i32
    %0 = arith.addi %arg1, %c1_i32 : i32
    %c1_i32_0 = arith.constant 1 : i32
    %1 = arith.muli %0, %c1_i32_0 : i32
    %c0_i32 = arith.constant 0 : i32
    %c0_i32_1 = arith.constant 0 : i32
    return %arg0, %c0_i32, %1 : i32, i32, i32
  }
  func.func @transform_2(%arg0: i32, %arg1: i32) -> (i32, i32) {
    %c0_i32 = arith.constant 0 : i32
    %c0_i32_0 = arith.constant 0 : i32
    %c0_i32_1 = arith.constant 0 : i32
    return %c0_i32, %c0_i32_0 : i32, i32
  }
  func.func @transform_3(%arg0: i32, %arg1: i32) -> (i32, i32) {
    %c0_i32 = arith.constant 0 : i32
    %c0_i32_0 = arith.constant 0 : i32
    %c0_i32_1 = arith.constant 0 : i32
    return %c0_i32, %c0_i32_0 : i32, i32
  }
  func.func @transform_4(%arg0: i32, %arg1: i32) -> (i32, i32, i32) {
    %c0_i32 = arith.constant 0 : i32
    %c0_i32_0 = arith.constant 0 : i32
    return %arg0, %c0_i32, %arg1 : i32, i32, i32
  }
}

</mosaic_0001>

<bundles_post_ra>
// kernel: tpu_custom_call.1
= control target key start
LH: loop header
LB: loop body
LE: loop exit
PB: predicated region body
PF: predicated region fallthrough
CT: control target
= control target key end

     0   :  { %s906_s0 = inlined_call_operand.hbm [shape: f32[2,16,256], index: 0, kind: input, shape index: {}]   ;;  %s907_s1 = inlined_call_operand.hbm [shape: f32[2,16,256], index: 1, kind: input, shape index: {}]   ;;  %s908_s2 = inlined_call_operand.vmem [shape: f32[8,40], index: 2, kind: input, shape index: {}]   ;;  %s909_s3 = inlined_call_operand.vmem [shape: f32[8,1], index: 3, kind: input, shape index: {}]   ;;  %s910_s4 = inlined_call_operand.hbm [shape: f32[2,8,128], index: 4, kind: output, shape index: {}]  }
   0x1   :  { %913 = sst [smem:[#allocation13_spill]] %s906_s0 }
   0x2   :  { %9 = vsyncpa [#allocation3], 0 }
   0x3   :  { %11 = vsyncpa [#allocation3 + $0x1], 0 }
   0x4   :  { %12 = vsyncpa [#allocation6], 0 }
   0x5   :  { %14 = vsyncpa [#allocation6 + $0x1], 0 }
   0x6   :  { %15 = vsyncpa [#allocation4], 0 }
   0x7   :  { %17 = vsyncpa [#allocation4 + $0x1], 0  ;;  %s758_s15 = smov 0   ;;  %s760_s16 = smov 0  }
   0x8   :  { %s762_s17 = smov 0   ;;  %s764_s18 = smov 0  }
   0x9   :  { %s766_s19 = smov 0   ;;  %s768_s20 = smov 0  }
   0xa LB: > { %914 = sst [smem:[#allocation11_spill]] %s721_s19  ;;  %s468_s21 = sadd.s32 4294967295, %s725_s20   ;;  %s725_s20 = sphi %s768_s20, %s23_s20   ;;  %s721_s19 = sphi %s766_s19, %s923_s19   ;;  %s717_s18 = sphi %s764_s18, %s922_s18   ;;  %s713_s17 = sphi %s762_s17, %s926_s17   ;;  %s709_s16 = sphi %s760_s16, %s925_s16   ;;  %s705_s15 = sphi %s758_s15, %s924_s15  }
   0xb   : > { %s469_s22 = sadd.s32 4294967294, %s725_s20   ;;  %s35_s23 = sadd.s32 1, %s721_s19 }
   0xc   : > { %s44_s24 = sadd.s32 1, %s713_s17  ;;  %p37_p0 = scmp.ge.s32.totalorder %s35_s23, 2 }
   0xd   : > { %p51_p1 = scmp.ne.s32.totalorder %s713_s17, %s709_s16  ;;  %p52_p2 = scmp.eq.s32.totalorder %s725_s20, 0 }
   0xe   : > { %p57_p3 = scmp.ne.s32.totalorder %s709_s16, %s705_s15  ;;  %s928_s23 = smov (%p37_p0, %s35_s23), 0 }
   0xf   : > { %915 = sst [smem:[#allocation12_spill]] %s928_s23  ;;  %p799_p4 = por %p52_p2, %p51_p1 }
  0x10   : > { %p58_p5 = scmp.eq.s32.totalorder %s468_s21, 0  ;;  %s39_s26 = ssub.s32 %s721_s19, %s928_s23 }
  0x11   : > { %p155_p6 = scmp.eq.s32.totalorder %s468_s21, 1  ;;  %p42_p7 = scmp.eq.s32.totalorder %s39_s26, 0 }
  0x12   : > { %p805_p8 = por %p58_p5, %p57_p3  ;;  %p161_p10 = scmp.eq.s32.totalorder %s469_s22, 1 }
  0x13   : > { %p809_p9 = por %p155_p6, %p51_p1  ;;  %p471_p12 = scmp.ge.s32.totalorder %s725_s20, 2 }
  0x14   : > { %s814_s29 = scalar_select %p42_p7, %s713_s17, %s44_s24  }
  0x15   : > { %p816_p11 = por %p161_p10, %p57_p3  ;;  %p506_p13 = scmp.lt.s32.totalorder %s725_s20, 2 }
  0x16   : > { %s823_s5 = sand.u32 1, %s713_s17   ;;  %s487_s7 = sshll.u32 %s721_s19, 5 }
  0x17   : > { %s472_s6 = sshll.u32 %s823_s5, 4  ;;  %s920_s0 = sld [smem:[#allocation13_spill]] }
  0x18   : > { %s191_s11 = scalar_lea.vmem [#allocation2], %s472_s6  ;;  %p832_p0 = pnand %p506_p13, %p799_p4 }
  0x19   : > { %s200_s12 = sshll.u32 %s191_s11, 4  ;;  %s188_s21 = scalar_lea.sflag [#allocation3], %s823_s5  ;;  %s201_s12 = int_to_ptr.vmem [resolvable:$true] %s200_s12 }
  0x1a   : > { %s727_s22 = smov 256   ;;  %s728_s24 = smov 128  }
  0x1b   : > { %s729_s26 = smov 8   ;;  %p478_p1 = scmp.ge.s32.totalorder %s725_s20, 1 }
  0x1c   : > { %p232_p2 = scmp.lt.s32.totalorder %s725_s20, 3  ;;  %s401_s25 = scalar_lea.hbm %s907_s1, %s487_s7 }
  0x1d   : > { %s197_s10 = scalar_lea.hbm %s920_s0, %s487_s7  ;;  %s214_s11 = scalar_lea.vmem [#allocation5], %s472_s6 }
  0x1e   : > { %s198_s13 = sshll.u32 %s197_s10, 4  ;;  %p233_p3 = pnand %p478_p1, %p232_p2  ;;  %s199_s13 = int_to_ptr.hbm [resolvable:$true] %s198_s13 }
  0x1f   : > { %498 = dma.hbm_to_vmem [thread:$0]  (!%p832_p0), %s199_s13, 256, %s201_s12, %s188_s21, %s727_s22, %s728_s24, %s729_s26  }
  0x20   : > { %s402_s10 = scalar_lea.hbm %s401_s25, 8  ;;  %s224_s0 = sshll.u32 %s214_s11, 4  ;;  %s225_s0 = int_to_ptr.vmem [resolvable:$true] %s224_s0 }
  0x21   : > { %s222_s23 = sshll.u32 %s402_s10, 4  ;;  %s211_s19 = scalar_lea.sflag [#allocation6], %s823_s5  ;;  %s223_s23 = int_to_ptr.hbm [resolvable:$true] %s222_s23 }
  0x22   : > { %501 = dma.hbm_to_vmem [thread:$0]  (!%p832_p0), %s223_s23, 256, %s225_s0, %s211_s19, %s727_s22, %s728_s24, %s729_s26  }
  0x23   : > { %236 = sbr.rel (%p233_p3) target bundleno = 311 (0x137), region = 36  ;;  %s848_s12 = sand.u32 (!%p233_p3), 1, %s709_s16  }
  0x24   : > { %s479_s13 = sshll.u32 (!%p233_p3), %s848_s12, 4  ;;  %s239_s21 = scalar_lea.sflag (!%p233_p3), [#allocation3], %s848_s12 }
  0x25   : > { %s242_s8 = scalar_lea.vmem (!%p233_p3), [#allocation2], %s479_s13 }
  0x28   : > { %692 = dma.done.wait (%p805_p8), %s239_s21, 256  }
  0x29   : > { %694 = vsyncadd (%p805_p8), %s239_s21, 4294967040  ;;  %s249_s5 = scalar_lea.sflag [#allocation6], %s848_s12  ;;  %s252_s6 = scalar_lea.vmem [#allocation5], %s479_s13 }
  0x2a   : > { %696 = dma.done.wait (%p805_p8), %s249_s5, 256  }
  0x2b   : > { %698 = vsyncadd (%p805_p8), %s249_s5, 4294967040  ;;  %v284_v0 = vld [vmem:[%s242_s8] sm:$0xff]  ;;  %s730_s0 = smov 126   ;;  %s731_s19 = smov 127   ;;  %v285_v3 = vld [vmem:[%s242_s8 + $0x8] sm:$0xff]  ;;  %v732_v7 = vmov 0  }
  0x2c   : > { %v286_v1 = vld [vmem:[%s252_s6] sm:$0xff]  ;;  %v287_v4 = vld [vmem:[%s252_s6 + $0x8] sm:$0xff]  ;;  %577 = vset.pattern.permute.xlu1 %v732_v7  ;;  %578 = vset.pattern.permute.xlu0 %v732_v7  ;;  %vm309_vm0 = vcmask 1031168   ;;  %vm294_vm1 = vcmask 1039360   ;;  %vm319_vm2 = vcmask 326656   ;;  %s481_s22 = sshll.u32 %s848_s12, 3 }
  0x2d   : > { %v562_v2 = vpack.i.bf16 %v286_v1, %v284_v0  ;;  %v567_v5 = vpack.i.bf16 %v287_v4, %v285_v3  ;;  %v313_v6 = vld [vmem:[%s909_s3] sm:$0xff]  ;;  %s484_s24 = sshll.u32 %s717_s18, 3  ;;  %s282_s10 = scalar_lea.vmem [#allocation7], %s481_s22 }
  0x2e   : > { %v312_v20 = vld [vmem:[%s908_s2] sm:$0xff]  ;;  %s356_s25 = scalar_lea.hbm %s910_s4, %s484_s24  ;;  %s358_s11 = sshll.u32 %s282_s10, 4  ;;  %s359_s11 = int_to_ptr.vmem [resolvable:$true] %s358_s11 }
  0x2f   : > { %563 = vrot.lane.b32.xlu0 %v562_v2, %s730_s0  ;;  %573 = vrot.lane.b32.xlu1 %v562_v2, %s731_s19  ;;  %s360_s13 = sshll.u32 %s356_s25, 4  ;;  %s345_s21 = scalar_lea.sflag [#allocation4], %s848_s12  ;;  %s361_s13 = int_to_ptr.hbm [resolvable:$true] %s360_s13 }
  0x30   : > { %s653_s8 = sshra.s32 %s361_s13, 4  ;;  %s659_s0 = scalar_lea.hbm %s910_s4, 16  ;;  %s654_s8 = int_to_ptr.hbm [resolvable:$true] %s653_s8 }
  0x31   : > { %s655_s5 = scalar_lea.hbm %s654_s8, 8  ;;  %p660_p7 = scmp.lt.s32.totalorder %s654_s8, %s910_s4 }
  0x32   : > { %p656_p4 = scmp.ne.s32.totalorder %s654_s8, %s655_s5  ;;  %p661_p8 = scmp.lt.s32.totalorder %s659_s0, %s655_s5 }
  0x34   : > { %p657_p5 = pnand %p656_p4, %p809_p9  ;;  %p662_p10 = por %p661_p8, %p660_p7 }
  0x36   : > { %p658_p6 = pneg %p657_p5 }
  0x37   : > { %568 = vrot.lane.b32.xlu0 %v567_v5, %s731_s19  ;;  %316 = vperm.xlu1 %577, %v313_v6  }
  0x38   : > { %p663_p13 = pnand %p662_p10, %p658_p6 }
  0xa1   : > { %v564_v8 = vpop.permute.xlu0 %563  ;;  %v574_v12 = vpop.permute.xlu1 %573 }
  0xa2   : > { %v566_v9 = vunpack.i.h.bf16 %v564_v8  ;;  %v565_v10 = vunpack.i.l.bf16 %v564_v8  ;;  %v576_v13 = vunpack.i.h.bf16 %v574_v12  ;;  %v575_v14 = vunpack.i.l.bf16 %v574_v12 }
  0xa4   : > { %v310_v11 = vsel %vm309_vm0, %v565_v10, %v566_v9  ;;  %v295_v19 = vsel %vm294_vm1, %v575_v14, %v576_v13 }
  0xa5   : > { %334 = vmatpush.msra.mxu0 %v310_v11 }
  0xa9   : > { %v569_v15 = vpop.permute.xlu0 %568  ;;  %v317_v21 = vpop.permute.xlu1 %316 }
  0xaa   : > { %v571_v16 = vunpack.i.h.bf16 %v569_v15  ;;  %v570_v17 = vunpack.i.l.bf16 %v569_v15 }
  0xac   : > { %v303_v18 = vsel %vm294_vm1, %v570_v17, %v571_v16 }
  0xad   : > { %335 = vmatpush.msra.mxu0 %v303_v18 }
  0xaf   : > { %336 = vmatpush.msra.mxu0 %v295_v19 }
  0xb1   : > { %337 = vmatpush.msra.mxu0 %v285_v3 }
  0xb3   : > { %338 = vmatpush.msra.mxu0 %v284_v0 }
  0xb4   : > { %482 = vmatmul.msk.f32.vlgmr.msra.gmra.mxu0 %vm319_vm2, %v312_v20 }
 0x131   : > { %v340_v22 = vpop.f32.mrf.mxu0 }
 0x132   : > { %v341_v23 = vadd.f32 %v340_v22, %v317_v21 }
 0x134   : > { %343 = vst [vmem:[%s282_s10] sm:$0xff] %v341_v23 }
 0x135   : > { %666 = shalt.err (!%p663_p13)
}
 0x136   : > { %493 = dma.vmem_to_hbm [thread:$0]  (%p809_p9), %s359_s11, 128, %s361_s13, %s345_s21  }
 0x137 PF: > { %s372_s12 = sand.u32 1, %s705_s15   ;;  %p503_p0 = pnand %p471_p12, %p816_p11 }
 0x138   : > { %s373_s7 = scalar_lea.sflag [#allocation4], %s372_s12 }
 0x139   : > { %p504_p1 = pneg %p503_p0 }
 0x13b   : > { %700 = dma.done.wait (%p504_p1), %s373_s7, 128  }
 0x13c   : > { %702 = vsyncadd (%p504_p1), %s373_s7, 4294967168  ;;  %s23_s20 = sadd.s32 1, %s725_s20   ;;  %s922_s18 = sld [smem:[#allocation11_spill]] }
 0x13d   : > { %p20_p2 = scmp.ge.s32.totalorder %s23_s20, 4   ;;  %s923_s19 = sld [smem:[#allocation12_spill]] }
 0x13e   : > { %s924_s15 = smov %s709_s16  ;;  %s925_s16 = smov %s713_s17 }
 0x13f   : > { %s926_s17 = smov %s814_s29  ;;  %22 = sbr.rel (!%p20_p2) target bundleno = 10 (0xa), region = 94 }
 0x144   :  { %379 = vsyncpa [#allocation3], 1 }
 0x145   :  { %381 = vsyncpa [#allocation3 + $0x1], 1 }
 0x146   :  { %382 = vsyncpa [#allocation6], 1 }
 0x147   :  { %384 = vsyncpa [#allocation6 + $0x1], 1 }
 0x148   :  { %385 = vsyncpa [#allocation4], 1 }
 0x149   :  { %387 = vsyncpa [#allocation4 + $0x1], 1 }

</bundles_post_ra>
